<compile_context>
chip_gen: v7x
topology: tpu7x:2x2x1
jax: 0.10.0
libtpu: 0.0.40
codegen_flags: <defaults>
</compile_context>

<pallas_src>
import functools

import jax
import jax.numpy as jnp
from jax.experimental import pallas as pl
from jax.experimental.pallas import tpu as pltpu

LANE = 128

CONFIGS = {
    '0.25': {'input_channel': 8, 'block_0': [1, [[8, 8]]], 'block_1': [2, [[48, 8], [48, 8]]],
             'block_2': [2, [[48, 8], [48, 8], [48, 8]]],
             'block_3': [2, [[48, 16], [96, 16], [96, 16], [96, 16]]],
             'block_4': [1, [[96, 24], [144, 24], [144, 24]]],
             'block_5': [2, [[144, 40], [240, 40], [240, 40]]],
             'block_6': [1, [[240, 80]]], 'feature_channel': 1280},
    '0.5': {'input_channel': 16, 'block_0': [1, [[16, 8]]], 'block_1': [2, [[48, 16], [96, 16]]],
            'block_2': [2, [[96, 16], [96, 16], [96, 16]]],
            'block_3': [2, [[96, 32], [192, 32], [192, 32], [192, 32]]],
            'block_4': [1, [[192, 48], [288, 48], [288, 48]]],
            'block_5': [2, [[288, 80], [480, 80], [480, 80]]],
            'block_6': [1, [[480, 160]]], 'feature_channel': 1280},
    '0.75': {'input_channel': 24, 'block_0': (1, [(24, 16)]), 'block_1': (2, [(96, 24), (144, 24)]),
             'block_2': (2, [(144, 24), (144, 24), (144, 24)]),
             'block_3': (2, [(144, 48), (288, 48), (288, 48), (288, 48)]),
             'block_4': (1, [(288, 72), (432, 72), (432, 72)]),
             'block_5': (2, [(432, 120), (720, 120), (720, 120)]),
             'block_6': (1, [(720, 240)]), 'feature_channel': 1280},
    '1.0': {'input_channel': 32, 'block_0': (1, [(32, 16)]), 'block_1': (2, [(96, 24), (144, 24)]),
            'block_2': (2, [(144, 32), (192, 32), (192, 32)]),
            'block_3': (2, [(192, 64), (384, 64), (384, 64), (384, 64)]),
            'block_4': (1, [(384, 96), (576, 96), (576, 96)]),
            'block_5': (2, [(576, 160), (960, 160), (960, 160)]),
            'block_6': (1, [(960, 320)]), 'feature_channel': 1280},
}


# ---------------------------------------------------------------------------
# helpers
# ---------------------------------------------------------------------------
def _ru(x, m):
    return (x + m - 1) // m * m


def _pick_tile(total, cap, mult):
    """Largest tile <= cap that divides `total` (total assumed multiple of `mult` if > cap)."""
    if total <= cap:
        return total
    t = (cap // mult) * mult
    while t > mult and total % t:
        t -= mult
    return t


def _pick_row_chunk(ho, wo, cp, budget=64 * 1024):
    per_row = wo * cp * 4
    rc = max(1, min(ho, max(1, budget // per_row)))
    while ho % rc:
        rc -= 1
    return rc


def _im2col_nhwc(x, kh, kw, stride, padding):
    n, h, w, c = x.shape
    xp = jnp.pad(x, ((0, 0), (padding, padding), (padding, padding), (0, 0)))
    ho = (h + 2 * padding - kh) // stride + 1
    wo = (w + 2 * padding - kw) // stride + 1
    cols = []
    for ki in range(kh):
        for kj in range(kw):
            cols.append(xp[:, ki:ki + stride * ho:stride, kj:kj + stride * wo:stride, :])
    return jnp.concatenate(cols, axis=-1), ho, wo


# ---------------------------------------------------------------------------
# Kernel 1: tiled conv-as-matmul with fused BatchNorm statistics
#   grid = (Cout tiles [parallel], M tiles [arbitrary], K tiles [arbitrary])
# ---------------------------------------------------------------------------
def _matmul_stats_kernel(x_ref, w_ref, y_ref, sum_ref, ssq_ref, acc_sc, sum_sc, ssq_sc):
    i = pl.program_id(1)
    k = pl.program_id(2)
    ni = pl.num_programs(1)
    nk = pl.num_programs(2)

    @pl.when(k == 0)
    def _():
        acc_sc[...] = jnp.zeros_like(acc_sc)

    @pl.when(jnp.logical_and(i == 0, k == 0))
    def _():
        sum_sc[...] = jnp.zeros_like(sum_sc)
        ssq_sc[...] = jnp.zeros_like(ssq_sc)

    acc_sc[...] += jnp.dot(x_ref[...], w_ref[...], preferred_element_type=jnp.float32)

    @pl.when(k == nk - 1)
    def _():
        acc = acc_sc[...]                     # f32, before any down-cast
        y_ref[...] = acc.astype(y_ref.dtype)
        tm, tn = acc.shape
        a8 = acc.reshape(tm // 8, 8, tn)      # full-sublane accumulation into (8, TN) scratch
        sum_sc[...] += jnp.sum(a8, axis=0)
        ssq_sc[...] += jnp.sum(a8 * a8, axis=0)

    @pl.when(jnp.logical_and(i == ni - 1, k == nk - 1))
    def _():
        sum_ref[...] = jnp.sum(sum_sc[...], axis=0, keepdims=True)
        ssq_ref[...] = jnp.sum(ssq_sc[...], axis=0, keepdims=True)


def _conv_matmul_bn_stats(rows, w_mat, out_dtype):
    mp, kdim = rows.shape
    np_ = w_mat.shape[1]
    tm = _pick_tile(mp, 512, 8)
    tn = _pick_tile(np_, 256, LANE)
    tk = _pick_tile(kdim, 512, LANE) if kdim % LANE == 0 else kdim
    grid = (np_ // tn, mp // tm, kdim // tk)
    return pl.pallas_call(
        _matmul_stats_kernel,
        out_shape=(jax.ShapeDtypeStruct((mp, np_), out_dtype),
                   jax.ShapeDtypeStruct((1, np_), jnp.float32),
                   jax.ShapeDtypeStruct((1, np_), jnp.float32)),
        grid_spec=pltpu.PrefetchScalarGridSpec(
            num_scalar_prefetch=0,
            grid=grid,
            in_specs=[pl.BlockSpec((tm, tk), lambda j, i, k: (i, k)),
                      pl.BlockSpec((tk, tn), lambda j, i, k: (k, j))],
            out_specs=[pl.BlockSpec((tm, tn), lambda j, i, k: (i, j)),
                       pl.BlockSpec((1, tn), lambda j, i, k: (0, j)),
                       pl.BlockSpec((1, tn), lambda j, i, k: (0, j))],
            scratch_shapes=[pltpu.VMEM((tm, tn), jnp.float32),
                            pltpu.VMEM((8, tn), jnp.float32),
                            pltpu.VMEM((8, tn), jnp.float32)]),
        compiler_params=pltpu.CompilerParams(
            dimension_semantics=("parallel", "arbitrary", "arbitrary")),
    )(rows, w_mat)


# ---------------------------------------------------------------------------
# Kernel 2: depthwise 3x3 conv (VPU multiply-reduce, no dense matmul / no im2col)
#   with fused BatchNorm statistics.  Input is phase-decomposed so only unit-stride
#   slices are needed inside the kernel.
# ---------------------------------------------------------------------------
def _dw_stats_kernel(x_ref, w_ref, y_ref, sum_ref, ssq_ref, sum_sc, ssq_sc, *,
                     stride, row_chunk):
    b = pl.program_id(0)
    nb = pl.num_programs(0)
    _, ho, wo, cp = y_ref.shape

    @pl.when(b == 0)
    def _():
        sum_sc[...] = jnp.zeros_like(sum_sc)
        ssq_sc[...] = jnp.zeros_like(ssq_sc)

    taps_w = [w_ref[pl.ds(t, 1), :].astype(jnp.float32).reshape(1, 1, cp) for t in range(9)]

    def body(c, carry):
        r0 = c * row_chunk
        acc = jnp.zeros((row_chunk, wo, cp), jnp.float32)
        for ki in range(3):
            for kj in range(3):
                oh = ki // stride
                ow = kj // stride
                c0 = ((ki % stride) * stride + (kj % stride)) * cp
                xt = x_ref[0, pl.ds(r0 + oh, row_chunk), pl.ds(ow, wo), pl.ds(c0, cp)]
                acc = acc + xt.astype(jnp.float32) * taps_w[ki * 3 + kj]
        y_ref[0, pl.ds(r0, row_chunk), :, :] = acc.astype(y_ref.dtype)
        sum_sc[...] += jnp.sum(jnp.sum(acc, axis=0), axis=0, keepdims=True)
        ssq_sc[...] += jnp.sum(jnp.sum(acc * acc, axis=0), axis=0, keepdims=True)
        return carry

    jax.lax.fori_loop(0, ho // row_chunk, body, 0)

    @pl.when(b == nb - 1)
    def _():
        sum_ref[...] = sum_sc[...]
        ssq_ref[...] = ssq_sc[...]


# ---------------------------------------------------------------------------
# Kernel 3: BatchNorm affine (+ ReLU6) (+ residual add), in-place on the conv output
# ---------------------------------------------------------------------------
def _bn_act_kernel(y_ref, scale_ref, bias_ref, o_ref, *, relu6):
    z = y_ref[...].astype(jnp.float32) * scale_ref[...] + bias_ref[...]
    if relu6:
        z = jnp.clip(z, 0.0, 6.0)
    o_ref[...] = z.astype(o_ref.dtype)


def _bn_act_add_kernel(y_ref, scale_ref, bias_ref, res_ref, o_ref, *, relu6):
    z = y_ref[...].astype(jnp.float32) * scale_ref[...] + bias_ref[...]
    if relu6:
        z = jnp.clip(z, 0.0, 6.0)
    o_ref[...] = (z + res_ref[...].astype(jnp.float32)).astype(o_ref.dtype)


def _bn_act_rows(y_rows, scale, bias, res_rows, relu6, out_dtype):
    mp, cp = y_rows.shape
    tm = _pick_tile(mp, 512, 8)
    if res_rows is None:
        kern = functools.partial(_bn_act_kernel, relu6=relu6)
        in_specs = [pl.BlockSpec((tm, cp), lambda i: (i, 0)),
                    pl.BlockSpec((1, cp), lambda i: (0, 0)),
                    pl.BlockSpec((1, cp), lambda i: (0, 0))]
        args = (y_rows, scale, bias)
    else:
        kern = functools.partial(_bn_act_add_kernel, relu6=relu6)
        in_specs = [pl.BlockSpec((tm, cp), lambda i: (i, 0)),
                    pl.BlockSpec((1, cp), lambda i: (0, 0)),
                    pl.BlockSpec((1, cp), lambda i: (0, 0)),
                    pl.BlockSpec((tm, cp), lambda i: (i, 0))]
        args = (y_rows, scale, bias, res_rows)
    alias = {0: 0} if y_rows.dtype == out_dtype else {}
    return pl.pallas_call(
        kern,
        out_shape=jax.ShapeDtypeStruct((mp, cp), out_dtype),
        grid_spec=pltpu.PrefetchScalarGridSpec(
            num_scalar_prefetch=0,
            grid=(mp // tm,),
            in_specs=in_specs,
            out_specs=pl.BlockSpec((tm, cp), lambda i: (i, 0))),
        compiler_params=pltpu.CompilerParams(dimension_semantics=("parallel",)),
        input_output_aliases=alias,
    )(*args)


# ---------------------------------------------------------------------------
# layer-level wrappers (jitted; cached per distinct shape/config signature)
# ---------------------------------------------------------------------------
@functools.partial(jax.jit, static_argnames=("kh", "kw", "stride", "padding",
                                             "relu6", "use_bf16", "eps"))
def _conv_bn_act_layer(x, w_mat, gamma, beta, residual, *, kh, kw, stride, padding,
                       relu6, use_bf16, eps):
    """Conv (bias=False) + train-mode BatchNorm + optional ReLU6 (+ optional residual
    added after BN).  x is NHWC; output is NHWC with channels = w_mat.shape[1]."""
    n, h, w, cx = x.shape
    cout_p = w_mat.shape[1]
    comp = jnp.bfloat16 if use_bf16 else jnp.float32
    act = comp

    if kh == 1 and kw == 1 and stride == 1 and padding == 0:
        ho, wo = h, w
        rows = x.reshape(n * h * w, cx)
    else:
        patches, ho, wo = _im2col_nhwc(x, kh, kw, stride, padding)
        rows = patches.reshape(n * ho * wo, kh * kw * cx)
    m = n * ho * wo
    mp = _ru(m, 8)
    if mp > m:
        rows = jnp.pad(rows, ((0, mp - m), (0, 0)))

    y_rows, sums, ssqs = _conv_matmul_bn_stats(rows.astype(comp), w_mat.astype(comp), act)

    # fold batch statistics into scale/bias (biased variance, as BN uses for normalization)
    mean = sums / m
    var = jnp.maximum(ssqs / m - mean * mean, 0.0)
    scale = gamma * jax.lax.rsqrt(var + eps)
    bias = beta - mean * scale

    res_rows = None
    if residual is not None:
        res_rows = residual.reshape(n * ho * wo, cout_p).astype(act)
        if mp > m:
            res_rows = jnp.pad(res_rows, ((0, mp - m), (0, 0)))

    out_rows = _bn_act_rows(y_rows, scale, bias, res_rows, relu6, act)
    return out_rows[:m].reshape(n, ho, wo, cout_p)


@functools.partial(jax.jit, static_argnames=("stride", "use_bf16", "eps"))
def _dw_bn_act_layer(x, w9, gamma, beta, *, stride, use_bf16, eps):
    """Depthwise 3x3 conv (padding=1, groups=C) + train-mode BatchNorm + ReLU6, NHWC."""
    n, h, w, cp = x.shape
    act = jnp.bfloat16 if use_bf16 else jnp.float32
    ho = (h + 2 - 3) // stride + 1
    wo = (w + 2 - 3) // stride + 1
    xp = jnp.pad(x, ((0, 0), (1, 1), (1, 1), (0, 0)))
    hp, wp = h + 2, w + 2

    if stride == 1:
        x_ph, hph, wph = xp, hp, wp
    else:
        hph, wph = -(-hp // stride), -(-wp // stride)
        parts = []
        for ph in range(stride):
            for pw in range(stride):
                t = xp[:, ph::stride, pw::stride, :]
                t = jnp.pad(t, ((0, 0), (0, hph - t.shape[1]), (0, wph - t.shape[2]), (0, 0)))
                parts.append(t)
        x_ph = jnp.concatenate(parts, axis=-1)   # (N, hph, wph, stride*stride*Cp)
    x_ph = x_ph.astype(act)

    row_chunk = _pick_row_chunk(ho, wo, cp)
    kern = functools.partial(_dw_stats_kernel, stride=stride, row_chunk=row_chunk)
    y, sums, ssqs = pl.pallas_call(
        kern,
        out_shape=(jax.ShapeDtypeStruct((n, ho, wo, cp), act),
                   jax.ShapeDtypeStruct((1, cp), jnp.float32),
                   jax.ShapeDtypeStruct((1, cp), jnp.float32)),
        grid_spec=pltpu.PrefetchScalarGridSpec(
            num_scalar_prefetch=0,
            grid=(n,),
            in_specs=[pl.BlockSpec((1, hph, wph, stride * stride * cp),
                                   lambda b: (b, 0, 0, 0)),
                      pl.BlockSpec((9, cp), lambda b: (0, 0))],
            out_specs=[pl.BlockSpec((1, ho, wo, cp), lambda b: (b, 0, 0, 0)),
                       pl.BlockSpec((1, cp), lambda b: (0, 0)),
                       pl.BlockSpec((1, cp), lambda b: (0, 0))],
            scratch_shapes=[pltpu.VMEM((1, cp), jnp.float32),
                            pltpu.VMEM((1, cp), jnp.float32)]),
        compiler_params=pltpu.CompilerParams(dimension_semantics=("arbitrary",)),
    )(x_ph, w9)

    m = n * ho * wo
    mean = sums / m
    var = jnp.maximum(ssqs / m - mean * mean, 0.0)
    scale = gamma * jax.lax.rsqrt(var + eps)
    bias = beta - mean * scale

    mp = _ru(m, 8)
    y_rows = y.reshape(m, cp)
    if mp > m:
        y_rows = jnp.pad(y_rows, ((0, mp - m), (0, 0)))
    out_rows = _bn_act_rows(y_rows, scale, bias, None, True, act)
    return out_rows[:m].reshape(n, ho, wo, cp)


# ---------------------------------------------------------------------------
# parameter construction / preparation (lane-padded, NHWC-friendly layouts)
# ---------------------------------------------------------------------------
def _prep_conv_w(w_oihw, cin_pad, cout_pad):
    o, i, kh, kw = w_oihw.shape
    wt = jnp.transpose(w_oihw, (2, 3, 1, 0))
    wt = jnp.pad(wt, ((0, 0), (0, 0), (0, cin_pad - i), (0, cout_pad - o)))
    return wt.reshape(kh * kw * cin_pad, cout_pad).astype(jnp.float32)


def _prep_dw_w(w_c133, cp):
    c = w_c133.shape[0]
    wt = jnp.transpose(w_c133[:, 0], (1, 2, 0)).reshape(9, c)
    return jnp.pad(wt, ((0, 0), (0, cp - c))).astype(jnp.float32)


def _prep_bn(gamma, beta, cp):
    c = gamma.shape[0]
    g = jnp.pad(gamma, (0, cp - c)).reshape(1, cp).astype(jnp.float32)
    b = jnp.pad(beta, (0, cp - c)).reshape(1, cp).astype(jnp.float32)
    return g, b


def build_params(key, widen="0.25"):
    cfg = CONFIGS[widen]
    keys = iter(jax.random.split(key, 512))

    def conv_w(cout, cin, k):
        fan_in = cin * k * k
        return jax.random.normal(next(keys), (cout, cin, k, k), jnp.float32) * (2.0 / fan_in) ** 0.5

    def bn(c):
        g = jax.random.uniform(next(keys), (c,), jnp.float32, 0.5, 1.5)
        b = jax.random.normal(next(keys), (c,), jnp.float32) * 0.1
        return g, b

    params = {}
    c_in = cfg["input_channel"]
    params["conv1"] = {"w": conv_w(c_in, 3, 3), "bn": bn(c_in)}
    blocks = []
    in_ch = c_in
    for bi in range(7):
        stride, chans = cfg[f"block_{bi}"]
        expansion = 1 if bi == 0 else 999
        blk = []
        for li in range(len(chans)):
            exp_ch, out_ch = chans[li]
            s = stride if li == 0 else 1
            lb = {"stride": s, "residual": (s == 1 and in_ch == out_ch)}
            if expansion != 1:
                lb["expand"] = {"w": conv_w(exp_ch, in_ch, 1), "bn": bn(exp_ch)}
            lb["dw"] = {"w": jax.random.normal(next(keys), (exp_ch, 1, 3, 3), jnp.float32) * (2.0 / 9) ** 0.5,
                        "bn": bn(exp_ch)}
            lb["pw"] = {"w": conv_w(out_ch, exp_ch, 1), "bn": bn(out_ch)}
            blk.append(lb)
            in_ch = out_ch
        blocks.append(blk)
    params["blocks"] = blocks
    params["conv2"] = {"w": conv_w(cfg["feature_channel"], in_ch, 1), "bn": bn(cfg["feature_channel"])}
    return params


def prep_pallas_params(params):
    def prep_cbn(p, cin_pad):
        w = p["w"]
        cout_p = _ru(w.shape[0], LANE)
        g, b = _prep_bn(*p["bn"], cout_p)
        return {"w": _prep_conv_w(w, cin_pad, cout_p), "g": g, "b": b}

    pp = {"conv1": prep_cbn(params["conv1"], params["conv1"]["w"].shape[1])}  # conv1 keeps 3 input channels
    blocks = []
    for blk in params["blocks"]:
        nb = []
        for lb in blk:
            nlb = {"stride": lb["stride"], "residual": lb["residual"]}
            if "expand" in lb:
                nlb["expand"] = prep_cbn(lb["expand"], _ru(lb["expand"]["w"].shape[1], LANE))
            c = lb["dw"]["w"].shape[0]
            cp = _ru(c, LANE)
            g, b = _prep_bn(*lb["dw"]["bn"], cp)
            nlb["dw"] = {"w": _prep_dw_w(lb["dw"]["w"], cp), "g": g, "b": b}
            nlb["pw"] = prep_cbn(lb["pw"], _ru(lb["pw"]["w"].shape[1], LANE))
            nb.append(nlb)
        blocks.append(nb)
    pp["blocks"] = blocks
    pp["conv2"] = prep_cbn(params["conv2"], _ru(params["conv2"]["w"].shape[1], LANE))
    pp["out_channels"] = params["conv2"]["w"].shape[0]
    return pp


# ---------------------------------------------------------------------------
# full MobileNetV2 forward (Pallas) and standalone single-layer wrappers
# ---------------------------------------------------------------------------
def mobilenetv2_pallas_forward(x_nchw, pp, *, use_bf16=False, eps=1e-5):
    act = jnp.bfloat16 if use_bf16 else jnp.float32
    x = jnp.transpose(x_nchw, (0, 2, 3, 1)).astype(act)   # NHWC once, at the boundary
    p = pp["conv1"]
    x = _conv_bn_act_layer(x, p["w"], p["g"], p["b"], None, kh=3, kw=3, stride=2,
                           padding=1, relu6=True, use_bf16=use_bf16, eps=eps)
    for blk in pp["blocks"]:
        for lb in blk:
            inp = x
            if "expand" in lb:
                e = lb["expand"]
                x = _conv_bn_act_layer(x, e["w"], e["g"], e["b"], None, kh=1, kw=1,
                                       stride=1, padding=0, relu6=True,
                                       use_bf16=use_bf16, eps=eps)
            d = lb["dw"]
            x = _dw_bn_act_layer(x, d["w"], d["g"], d["b"], stride=lb["stride"],
                                 use_bf16=use_bf16, eps=eps)
            pw = lb["pw"]
            res = inp if lb["residual"] else None
            x = _conv_bn_act_layer(x, pw["w"], pw["g"], pw["b"], res, kh=1, kw=1,
                                   stride=1, padding=0, relu6=False,
                                   use_bf16=use_bf16, eps=eps)
    p = pp["conv2"]
    x = _conv_bn_act_layer(x, p["w"], p["g"], p["b"], None, kh=1, kw=1, stride=1,
                           padding=0, relu6=True, use_bf16=use_bf16, eps=eps)
    x = x[..., :pp["out_channels"]]
    return jnp.transpose(x.astype(jnp.float32), (0, 3, 1, 2))


def conv_bn_relu6_pallas(x_nchw, w_oihw, gamma, beta, *, stride, padding, use_bf16=False, eps=1e-5):
    o, i, kh, kw = w_oihw.shape
    cout_p = _ru(o, LANE)
    act = jnp.bfloat16 if use_bf16 else jnp.float32
    x = jnp.transpose(x_nchw, (0, 2, 3, 1)).astype(act)
    w_mat = _prep_conv_w(w_oihw, i, cout_p)
    g, b = _prep_bn(gamma, beta, cout_p)
    y = _conv_bn_act_layer(x, w_mat, g, b, None, kh=kh, kw=kw, stride=stride,
                           padding=padding, relu6=True, use_bf16=use_bf16, eps=eps)
    return jnp.transpose(y[..., :o].astype(jnp.float32), (0, 3, 1, 2))


def depthwise_bn_relu6_pallas(x_nchw, w_c133, gamma, beta, *, stride, use_bf16=False, eps=1e-5):
    c = w_c133.shape[0]
    cp = _ru(c, LANE)
    act = jnp.bfloat16 if use_bf16 else jnp.float32
    x = jnp.transpose(x_nchw, (0, 2, 3, 1))
    x = jnp.pad(x, ((0, 0), (0, 0), (0, 0), (0, cp - c))).astype(act)
    w9 = _prep_dw_w(w_c133, cp)
    g, b = _prep_bn(gamma, beta, cp)
    y = _dw_bn_act_layer(x, w9, g, b, stride=stride, use_bf16=use_bf16, eps=eps)
    return jnp.transpose(y[..., :c].astype(jnp.float32), (0, 3, 1, 2))


# ---------------------------------------------------------------------------
# pure-JAX reference (mirrors the PyTorch module, f32, NCHW)
# ---------------------------------------------------------------------------
def _ref_conv_bn_act(x, w, gamma, beta, stride, padding, relu, groups=1, eps=1e-5):
    y = jax.lax.conv_general_dilated(
        x, w, (stride, stride), [(padding, padding), (padding, padding)],
        dimension_numbers=("NCHW", "OIHW", "NCHW"),
        feature_group_count=groups,
        precision=jax.lax.Precision.HIGHEST)
    mean = y.mean(axis=(0, 2, 3), keepdims=True)
    var = y.var(axis=(0, 2, 3), keepdims=True)        # biased, as BN normalization uses
    y = (y - mean) * jax.lax.rsqrt(var + eps) * gamma.reshape(1, -1, 1, 1) + beta.reshape(1, -1, 1, 1)
    if relu:
        y = jnp.clip(y, 0.0, 6.0)
    return y


def ref_mobilenet_forward(x, params, eps=1e-5):
    p = params["conv1"]
    x = _ref_conv_bn_act(x, p["w"], *p["bn"], 2, 1, True, 1, eps)
    for blk in params["blocks"]:
        for lb in blk:
            inp = x
            if "expand" in lb:
                e = lb["expand"]
                x = _ref_conv_bn_act(x, e["w"], *e["bn"], 1, 0, True, 1, eps)
            d = lb["dw"]
            x = _ref_conv_bn_act(x, d["w"], *d["bn"], lb["stride"], 1, True, d["w"].shape[0], eps)
            pw = lb["pw"]
            x = _ref_conv_bn_act(x, pw["w"], *pw["bn"], 1, 0, False, 1, eps)
            if lb["residual"]:
                x = x + inp
    p = params["conv2"]
    return _ref_conv_bn_act(x, p["w"], *p["bn"], 1, 0, True, 1, eps)


# ---------------------------------------------------------------------------
if __name__ == "__main__":
    key = jax.random.PRNGKey(0)
    k_params, k_x, k_layer = jax.random.split(key, 3)

    # --- 1) single ConvBNReLU(3x3, stride 2) layer: tight-ish f32 check + bf16 check ---
    # (f32 tolerance allows for the TPU MXU's reduced-precision f32 matmul passes)
    kw1, kg1, kb1, kx1, kdw, kdg, kdb = jax.random.split(k_layer, 7)
    x1 = jax.random.normal(kx1, (2, 8, 16, 16), jnp.float32)
    w1 = jax.random.normal(kw1, (32, 8, 3, 3), jnp.float32) * (2.0 / 72) ** 0.5
    g1 = jax.random.uniform(kg1, (32,), jnp.float32, 0.5, 1.5)
    b1 = jax.random.normal(kb1, (32,), jnp.float32) * 0.1
    ref1 = _ref_conv_bn_act(x1, w1, g1, b1, 2, 1, True)

    out1 = jax.block_until_ready(conv_bn_relu6_pallas(x1, w1, g1, b1, stride=2, padding=1))
    assert out1.shape == ref1.shape, (out1.shape, ref1.shape)
    assert jnp.allclose(out1, ref1, atol=2e-2, rtol=2e-2), float(jnp.max(jnp.abs(out1 - ref1)))

    out1b = jax.block_until_ready(
        conv_bn_relu6_pallas(x1, w1, g1, b1, stride=2, padding=1, use_bf16=True))
    assert jnp.allclose(out1b, ref1, atol=1e-1, rtol=1e-1), float(jnp.max(jnp.abs(out1b - ref1)))

    # --- 2) single depthwise 3x3 (stride 2) + BN + ReLU6: pure-VPU f32 path, tight check ---
    wd = jax.random.normal(kdw, (8, 1, 3, 3), jnp.float32) * (2.0 / 9) ** 0.5
    gd = jax.random.uniform(kdg, (8,), jnp.float32, 0.5, 1.5)
    bd = jax.random.normal(kdb, (8,), jnp.float32) * 0.1
    refd = _ref_conv_bn_act(x1, wd, gd, bd, 2, 1, True, groups=8)
    outd = jax.block_until_ready(depthwise_bn_relu6_pallas(x1, wd, gd, bd, stride=2))
    assert outd.shape == refd.shape, (outd.shape, refd.shape)
    assert jnp.allclose(outd, refd, atol=2e-3, rtol=2e-3), float(jnp.max(jnp.abs(outd - refd)))

    # --- 3) full MobileNetV2 (widen_factor=0.25) forward pass ---
    params = build_params(k_params, "0.25")
    pp = prep_pallas_params(params)
    x = jax.random.normal(k_x, (2, 3, 64, 64), jnp.float32)

    out = jax.block_until_ready(mobilenetv2_pallas_forward(x, pp, use_bf16=False))
    ref = jax.block_until_ready(ref_mobilenet_forward(x, params))
    assert out.shape == ref.shape, (out.shape, ref.shape)
    # end-to-end structural check; tolerance absorbs TPU matmul rounding compounded
    # over ~46 BatchNorm-renormalized conv layers
    assert jnp.allclose(out, ref, atol=1e-1, rtol=1e-1), float(jnp.max(jnp.abs(out - ref)))

    print("KERNEL_OK")
</pallas_src>

<mosaic_0001>
module attributes {stable_mosaic.version = 11 : i64} {
  func.func @_matmul_stats_kernel(%arg0: i32, %arg1: i32, %arg2: i32, %arg3: memref<128x72xf32, #tpu.memory_space<vmem>>, %arg4: memref<72x128xf32, #tpu.memory_space<vmem>>, %arg5: memref<128x128xf32, #tpu.memory_space<vmem>>, %arg6: memref<1x128xf32, #tpu.memory_space<vmem>>, %arg7: memref<1x128xf32, #tpu.memory_space<vmem>>, %arg8: memref<128x128xf32, #tpu.memory_space<vmem>>, %arg9: memref<8x128xf32, #tpu.memory_space<vmem>>, %arg10: memref<8x128xf32, #tpu.memory_space<vmem>>) attributes {dimension_semantics = [#tpu.dimension_semantics<parallel>, #tpu.dimension_semantics<arbitrary>, #tpu.dimension_semantics<arbitrary>], iteration_bounds = array<i64: 1, 1, 1>, scalar_prefetch = 0 : i64, scratch_operands = 3 : i64, tpu.core_type = #tpu.core_type<tc>, window_params = [{transform_indices = @transform_0, window_bounds = array<i64: 128, 72>}, {transform_indices = @transform_1, window_bounds = array<i64: 72, 128>}, {transform_indices = @transform_2, window_bounds = array<i64: 128, 128>}, {transform_indices = @transform_3, window_bounds = array<i64: 1, 128>}, {transform_indices = @transform_4, window_bounds = array<i64: 1, 128>}]} {
    %c0_i32 = arith.constant 0 : i32
    %0 = arith.cmpi eq, %arg2, %c0_i32 : i32
    %1 = arith.extui %0 : i1 to i32
    %c0_i32_0 = arith.constant 0 : i32
    %2 = arith.cmpi ne, %1, %c0_i32_0 : i32
    scf.if %2 {
      %cst_16 = arith.constant 0.000000e+00 : f32
      %22 = vector.broadcast %cst_16 : f32 to vector<128x128xf32>
      %c0_17 = arith.constant 0 : index
      %c0_18 = arith.constant 0 : index
      %23 = vector.load %arg8[%c0_17, %c0_18] : memref<128x128xf32, #tpu.memory_space<vmem>>, vector<128x128xf32>
      tpu.vector_store %arg8[%c0_17, %c0_18], %22 {strides = array<i32>} : memref<128x128xf32, #tpu.memory_space<vmem>>, vector<128x128xf32>,
    } else {
    }
    %c0_i32_1 = arith.constant 0 : i32
    %3 = arith.cmpi eq, %arg1, %c0_i32_1 : i32
    %c0_i32_2 = arith.constant 0 : i32
    %4 = arith.cmpi eq, %arg2, %c0_i32_2 : i32
    %5 = arith.andi %3, %4 : i1
    %6 = arith.extui %5 : i1 to i32
    %c0_i32_3 = arith.constant 0 : i32
    %7 = arith.cmpi ne, %6, %c0_i32_3 : i32
    scf.if %7 {
      %cst_16 = arith.constant 0.000000e+00 : f32
      %22 = vector.broadcast %cst_16 : f32 to vector<8x128xf32>
      %c0_17 = arith.constant 0 : index
      %c0_18 = arith.constant 0 : index
      %23 = vector.load %arg9[%c0_17, %c0_18] : memref<8x128xf32, #tpu.memory_space<vmem>>, vector<8x128xf32>
      tpu.vector_store %arg9[%c0_17, %c0_18], %22 {strides = array<i32>} : memref<8x128xf32, #tpu.memory_space<vmem>>, vector<8x128xf32>,
      %cst_19 = arith.constant 0.000000e+00 : f32
      %24 = vector.broadcast %cst_19 : f32 to vector<8x128xf32>
      %c0_20 = arith.constant 0 : index
      %c0_21 = arith.constant 0 : index
      %25 = vector.load %arg10[%c0_20, %c0_21] : memref<8x128xf32, #tpu.memory_space<vmem>>, vector<8x128xf32>
      tpu.vector_store %arg10[%c0_20, %c0_21], %24 {strides = array<i32>} : memref<8x128xf32, #tpu.memory_space<vmem>>, vector<8x128xf32>,
    } else {
    }
    %c0 = arith.constant 0 : index
    %c0_4 = arith.constant 0 : index
    %8 = vector.load %arg8[%c0, %c0_4] : memref<128x128xf32, #tpu.memory_space<vmem>>, vector<128x128xf32>
    %c0_5 = arith.constant 0 : index
    %c0_6 = arith.constant 0 : index
    %9 = vector.load %arg3[%c0_5, %c0_6] : memref<128x72xf32, #tpu.memory_space<vmem>>, vector<128x72xf32>
    %c0_7 = arith.constant 0 : index
    %c0_8 = arith.constant 0 : index
    %10 = vector.load %arg4[%c0_7, %c0_8] : memref<72x128xf32, #tpu.memory_space<vmem>>, vector<72x128xf32>
    %cst = arith.constant dense<0.000000e+00> : vector<128x128xf32>
    %11 = tpu.matmul %9, %10, %cst {dimension_numbers = #tpu.dot_dimension_numbers<[1], [0], [0], [1], [0, 0, 1, 1], [], []>} : vector<128x72xf32>, vector<72x128xf32>, vector<128x128xf32> -> vector<128x128xf32>
    %12 = arith.addf %8, %11 : vector<128x128xf32>
    %c0_9 = arith.constant 0 : index
    %c0_10 = arith.constant 0 : index
    %13 = vector.load %arg8[%c0_9, %c0_10] : memref<128x128xf32, #tpu.memory_space<vmem>>, vector<128x128xf32>
    tpu.vector_store %arg8[%c0_9, %c0_10], %12 {strides = array<i32>} : memref<128x128xf32, #tpu.memory_space<vmem>>, vector<128x128xf32>,
    %c0_i32_11 = arith.constant 0 : i32
    %14 = arith.cmpi eq, %arg2, %c0_i32_11 : i32
    %15 = arith.extui %14 : i1 to i32
    %c0_i32_12 = arith.constant 0 : i32
    %16 = arith.cmpi ne, %15, %c0_i32_12 : i32
    scf.if %16 {
      %c0_16 = arith.constant 0 : index
      %c0_17 = arith.constant 0 : index
      %22 = vector.load %arg8[%c0_16, %c0_17] : memref<128x128xf32, #tpu.memory_space<vmem>>, vector<128x128xf32>
      %c0_18 = arith.constant 0 : index
      %c0_19 = arith.constant 0 : index
      %23 = vector.load %arg5[%c0_18, %c0_19] : memref<128x128xf32, #tpu.memory_space<vmem>>, vector<128x128xf32>
      tpu.vector_store %arg5[%c0_18, %c0_19], %22 {strides = array<i32>} : memref<128x128xf32, #tpu.memory_space<vmem>>, vector<128x128xf32>,
      %24 = vector.shape_cast %22 : vector<128x128xf32> to vector<16x8x128xf32>
      %c0_20 = arith.constant 0 : index
      %c0_21 = arith.constant 0 : index
      %25 = vector.load %arg9[%c0_20, %c0_21] : memref<8x128xf32, #tpu.memory_space<vmem>>, vector<8x128xf32>
      %cst_22 = arith.constant dense<0.000000e+00> : vector<8x128xf32>
      %26 = vector.multi_reduction <add>, %24, %cst_22 [0] : vector<16x8x128xf32> to vector<8x128xf32>
      %27 = arith.addf %25, %26 : vector<8x128xf32>
      %c0_23 = arith.constant 0 : index
      %c0_24 = arith.constant 0 : index
      %28 = vector.load %arg9[%c0_23, %c0_24] : memref<8x128xf32, #tpu.memory_space<vmem>>, vector<8x128xf32>
      tpu.vector_store %arg9[%c0_23, %c0_24], %27 {strides = array<i32>} : memref<8x128xf32, #tpu.memory_space<vmem>>, vector<8x128xf32>,
      %c0_25 = arith.constant 0 : index
      %c0_26 = arith.constant 0 : index
      %29 = vector.load %arg10[%c0_25, %c0_26] : memref<8x128xf32, #tpu.memory_space<vmem>>, vector<8x128xf32>
      %30 = arith.mulf %24, %24 : vector<16x8x128xf32>
      %cst_27 = arith.constant dense<0.000000e+00> : vector<8x128xf32>
      %31 = vector.multi_reduction <add>, %30, %cst_27 [0] : vector<16x8x128xf32> to vector<8x128xf32>
      %32 = arith.addf %29, %31 : vector<8x128xf32>
      %c0_28 = arith.constant 0 : index
      %c0_29 = arith.constant 0 : index
      %33 = vector.load %arg10[%c0_28, %c0_29] : memref<8x128xf32, #tpu.memory_space<vmem>>, vector<8x128xf32>
      tpu.vector_store %arg10[%c0_28, %c0_29], %32 {strides = array<i32>} : memref<8x128xf32, #tpu.memory_space<vmem>>, vector<8x128xf32>,
    } else {
    }
    %c0_i32_13 = arith.constant 0 : i32
    %17 = arith.cmpi eq, %arg1, %c0_i32_13 : i32
    %c0_i32_14 = arith.constant 0 : i32
    %18 = arith.cmpi eq, %arg2, %c0_i32_14 : i32
    %19 = arith.andi %17, %18 : i1
    %20 = arith.extui %19 : i1 to i32
    %c0_i32_15 = arith.constant 0 : i32
    %21 = arith.cmpi ne, %20, %c0_i32_15 : i32
    scf.if %21 {
      %c0_16 = arith.constant 0 : index
      %c0_17 = arith.constant 0 : index
      %22 = vector.load %arg9[%c0_16, %c0_17] : memref<8x128xf32, #tpu.memory_space<vmem>>, vector<8x128xf32>
      %cst_18 = arith.constant dense<0.000000e+00> : vector<128xf32>
      %23 = vector.multi_reduction <add>, %22, %cst_18 [0] : vector<8x128xf32> to vector<128xf32>
      %24 = vector.shape_cast %23 : vector<128xf32> to vector<1x128xf32>
      %c0_19 = arith.constant 0 : index
      %c0_20 = arith.constant 0 : index
      %25 = vector.load %arg6[%c0_19, %c0_20] : memref<1x128xf32, #tpu.memory_space<vmem>>, vector<1x128xf32>
      tpu.vector_store %arg6[%c0_19, %c0_20], %24 {strides = array<i32>} : memref<1x128xf32, #tpu.memory_space<vmem>>, vector<1x128xf32>,
      %c0_21 = arith.constant 0 : index
      %c0_22 = arith.constant 0 : index
      %26 = vector.load %arg10[%c0_21, %c0_22] : memref<8x128xf32, #tpu.memory_space<vmem>>, vector<8x128xf32>
      %cst_23 = arith.constant dense<0.000000e+00> : vector<128xf32>
      %27 = vector.multi_reduction <add>, %26, %cst_23 [0] : vector<8x128xf32> to vector<128xf32>
      %28 = vector.shape_cast %27 : vector<128xf32> to vector<1x128xf32>
      %c0_24 = arith.constant 0 : index
      %c0_25 = arith.constant 0 : index
      %29 = vector.load %arg7[%c0_24, %c0_25] : memref<1x128xf32, #tpu.memory_space<vmem>>, vector<1x128xf32>
      tpu.vector_store %arg7[%c0_24, %c0_25], %28 {strides = array<i32>} : memref<1x128xf32, #tpu.memory_space<vmem>>, vector<1x128xf32>,
    } else {
    }
    return
  }
  func.func @transform_0(%arg0: i32, %arg1: i32, %arg2: i32) -> (i32, i32) {
    %c0_i32 = arith.constant 0 : i32
    return %arg1, %arg2 : i32, i32
  }
  func.func @transform_1(%arg0: i32, %arg1: i32, %arg2: i32) -> (i32, i32) {
    %c0_i32 = arith.constant 0 : i32
    return %arg2, %arg0 : i32, i32
  }
  func.func @transform_2(%arg0: i32, %arg1: i32, %arg2: i32) -> (i32, i32) {
    %c0_i32 = arith.constant 0 : i32
    return %arg1, %arg0 : i32, i32
  }
  func.func @transform_3(%arg0: i32, %arg1: i32, %arg2: i32) -> (i32, i32) {
    %c0_i32 = arith.constant 0 : i32
    %c0_i32_0 = arith.constant 0 : i32
    return %c0_i32, %arg0 : i32, i32
  }
  func.func @transform_4(%arg0: i32, %arg1: i32, %arg2: i32) -> (i32, i32) {
    %c0_i32 = arith.constant 0 : i32
    %c0_i32_0 = arith.constant 0 : i32
    return %c0_i32, %arg0 : i32, i32
  }
}

module attributes {stable_mosaic.version = 11 : i64} {
  func.func @_bn_act_kernel(%arg0: i32, %arg1: memref<128x128xf32, #tpu.memory_space<vmem>>, %arg2: memref<1x128xf32, #tpu.memory_space<vmem>>, %arg3: memref<1x128xf32, #tpu.memory_space<vmem>>, %arg4: memref<128x128xf32, #tpu.memory_space<vmem>>) attributes {dimension_semantics = [#tpu.dimension_semantics<parallel>], iteration_bounds = array<i64: 1>, scalar_prefetch = 0 : i64, scratch_operands = 0 : i64, tpu.core_type = #tpu.core_type<tc>, window_params = [{transform_indices = @transform_0, window_bounds = array<i64: 128, 128>}, {pipeline_mode = #tpu.pipeline_mode<synchronous>, transform_indices = @transform_1, window_bounds = array<i64: 1, 128>}, {pipeline_mode = #tpu.pipeline_mode<synchronous>, transform_indices = @transform_2, window_bounds = array<i64: 1, 128>}, {transform_indices = @transform_3, window_bounds = array<i64: 128, 128>}]} {
    %c0 = arith.constant 0 : index
    %c0_0 = arith.constant 0 : index
    %0 = vector.load %arg1[%c0, %c0_0] : memref<128x128xf32, #tpu.memory_space<vmem>>, vector<128x128xf32>
    %c0_1 = arith.constant 0 : index
    %c0_2 = arith.constant 0 : index
    %1 = vector.load %arg2[%c0_1, %c0_2] : memref<1x128xf32, #tpu.memory_space<vmem>>, vector<1x128xf32>
    %2 = vector.broadcast %1 : vector<1x128xf32> to vector<128x128xf32>
    %3 = arith.mulf %0, %2 : vector<128x128xf32>
    %c0_3 = arith.constant 0 : index
    %c0_4 = arith.constant 0 : index
    %4 = vector.load %arg3[%c0_3, %c0_4] : memref<1x128xf32, #tpu.memory_space<vmem>>, vector<1x128xf32>
    %5 = vector.broadcast %4 : vector<1x128xf32> to vector<128x128xf32>
    %6 = arith.addf %3, %5 : vector<128x128xf32>
    %cst = arith.constant 0.000000e+00 : f32
    %cst_5 = arith.constant 6.000000e+00 : f32
    %7 = vector.broadcast %cst : f32 to vector<128x128xf32>
    %8 = arith.maximumf %7, %6 : vector<128x128xf32>
    %9 = vector.broadcast %cst_5 : f32 to vector<128x128xf32>
    %10 = arith.minimumf %9, %8 : vector<128x128xf32>
    %c0_6 = arith.constant 0 : index
    %c0_7 = arith.constant 0 : index
    %11 = vector.load %arg4[%c0_6, %c0_7] : memref<128x128xf32, #tpu.memory_space<vmem>>, vector<128x128xf32>
    tpu.vector_store %arg4[%c0_6, %c0_7], %10 {strides = array<i32>} : memref<128x128xf32, #tpu.memory_space<vmem>>, vector<128x128xf32>,
    return
  }
  func.func @transform_0(%arg0: i32) -> (i32, i32) {
    %c0_i32 = arith.constant 0 : i32
    %c0_i32_0 = arith.constant 0 : i32
    return %arg0, %c0_i32 : i32, i32
  }
  func.func @transform_1(%arg0: i32) -> (i32, i32) {
    %c0_i32 = arith.constant 0 : i32
    %c0_i32_0 = arith.constant 0 : i32
    %c0_i32_1 = arith.constant 0 : i32
    return %c0_i32, %c0_i32_0 : i32, i32
  }
  func.func @transform_2(%arg0: i32) -> (i32, i32) {
    %c0_i32 = arith.constant 0 : i32
    %c0_i32_0 = arith.constant 0 : i32
    %c0_i32_1 = arith.constant 0 : i32
    return %c0_i32, %c0_i32_0 : i32, i32
  }
  func.func @transform_3(%arg0: i32) -> (i32, i32) {
    %c0_i32 = arith.constant 0 : i32
    %c0_i32_0 = arith.constant 0 : i32
    return %arg0, %c0_i32 : i32, i32
  }
}

</mosaic_0001>

<bundles_post_ra>
// kernel: _conv_bn_act_layer.3
= control target key start
LH: loop header
LB: loop body
LE: loop exit
PB: predicated region body
PF: predicated region fallthrough
CT: control target
= control target key end

     0   :  { %s288_s0 = inlined_call_operand.vmem [shape: f32[128,128], index: 0, kind: input, shape index: {}, may-alias: {0,3}]   ;;  %s289_s1 = inlined_call_operand.vmem [shape: f32[1,128], index: 1, kind: input, shape index: {}]   ;;  %s290_s2 = inlined_call_operand.vmem [shape: f32[1,128], index: 2, kind: input, shape index: {}]   ;;  %s291_s3 = inlined_call_operand.vmem [shape: f32[128,128], index: 3, kind: output, shape index: {}, may-alias: {0,3}]  }
   0x1   :  { %v14_v0 = vld [vmem:[%s288_s0] sm:$0xff]  ;;  %v15_v4 = vld [vmem:[%s288_s0 + $0x8] sm:$0xff]  ;;  %v16_v5 = vld [vmem:[%s288_s0 + $0x10] sm:$0xff] }
   0x2   :  { %v156_v1 = vld [vmem:[%s289_s1] ss:$0 sm:$0xff]  ;;  %v17_v6 = vld [vmem:[%s288_s0 + $0x18] sm:$0xff]  ;;  %v19_v11 = vld [vmem:[%s288_s0 + $0x28] sm:$0xff] }
   0x3   :  { %v161_v2 = vld [vmem:[%s290_s2] ss:$0 sm:$0xff]  ;;  %v37_v3 = vmul.f32 %v156_v1, %v14_v0  ;;  %v38_v7 = vmul.f32 %v156_v1, %v15_v4  ;;  %v39_v8 = vmul.f32 %v156_v1, %v16_v5  ;;  %v40_v9 = vmul.f32 %v156_v1, %v17_v6  ;;  %v20_v12 = vld [vmem:[%s288_s0 + $0x30] sm:$0xff]  ;;  %v21_v17 = vld [vmem:[%s288_s0 + $0x38] sm:$0xff] }
   0x4   :  { %v18_v10 = vld [vmem:[%s288_s0 + $0x20] sm:$0xff]  ;;  %v42_v15 = vmul.f32 %v156_v1, %v19_v11  ;;  %v43_v16 = vmul.f32 %v156_v1, %v20_v12  ;;  %v44_v21 = vmul.f32 %v156_v1, %v21_v17  ;;  %v23_v31 = vld [vmem:[%s288_s0 + $0x48] sm:$0xff]  ;;  %v24_v32 = vld [vmem:[%s288_s0 + $0x50] sm:$0xff] }
   0x5   :  { %v60_v13 = vadd.f32 %v161_v2, %v37_v3  ;;  %v41_v14 = vmul.f32 %v156_v1, %v18_v10  ;;  %v61_v18 = vadd.f32 %v161_v2, %v38_v7  ;;  %v62_v19 = vadd.f32 %v161_v2, %v39_v8  ;;  %v22_v30 = vld [vmem:[%s288_s0 + $0x40] sm:$0xff]  ;;  %v25_v37 = vld [vmem:[%s288_s0 + $0x58] sm:$0xff]  ;;  %v27_v43 = vld [vmem:[%s288_s0 + $0x68] sm:$0xff] }
   0x6   :  { %v63_v20 = vadd.f32 %v161_v2, %v40_v9  ;;  %v65_v24 = vadd.f32 %v161_v2, %v42_v15  ;;  %v66_v25 = vadd.f32 %v161_v2, %v43_v16  ;;  %v67_v29 = vadd.f32 %v161_v2, %v44_v21  ;;  %v26_v38 = vld [vmem:[%s288_s0 + $0x60] sm:$0xff]  ;;  %v28_v44 = vld [vmem:[%s288_s0 + $0x70] sm:$0xff] }
   0x7   :  { %v76_v22 = vmax.f32 %v60_v13, 0.0  ;;  %v64_v23 = vadd.f32 %v161_v2, %v41_v14  ;;  %v77_v26 = vmax.f32 %v61_v18, 0.0  ;;  %v78_v27 = vmax.f32 %v62_v19, 0.0 }
   0x8   :  { %v79_v28 = vmax.f32 %v63_v20, 0.0  ;;  %v81_v35 = vmax.f32 %v65_v24, 0.0  ;;  %v82_v36 = vmax.f32 %v66_v25, 0.0  ;;  %v83_v42 = vmax.f32 %v67_v29, 0.0 }
   0x9   :  { %v92_v33 = vmin.f32 %v76_v22, 6.0  ;;  %v80_v34 = vmax.f32 %v64_v23, 0.0  ;;  %v93_v39 = vmin.f32 %v77_v26, 6.0  ;;  %v94_v40 = vmin.f32 %v78_v27, 6.0 }
   0xa   :  { %v95_v41 = vmin.f32 %v79_v28, 6.0  ;;  %v97_v46 = vmin.f32 %v81_v35, 6.0  ;;  %v98_v47 = vmin.f32 %v82_v36, 6.0  ;;  %v45_v48 = vmul.f32 %v156_v1, %v22_v30 }
   0xb   :  { %108 = vst [vmem:[%s291_s3] sm:$0xff] %v92_v33  ;;  %v96_v45 = vmin.f32 %v80_v34, 6.0  ;;  %v99_v50 = vmin.f32 %v83_v42, 6.0  ;;  %v46_v51 = vmul.f32 %v156_v1, %v23_v31  ;;  %v47_v52 = vmul.f32 %v156_v1, %v24_v32 }
   0xc   :  { %v48_v53 = vmul.f32 %v156_v1, %v25_v37  ;;  %v68_v54 = vadd.f32 %v161_v2, %v45_v48  ;;  %v49_v55 = vmul.f32 %v156_v1, %v26_v38  ;;  %v50_v56 = vmul.f32 %v156_v1, %v27_v43 }
   0xd   :  { %v51_v57 = vmul.f32 %v156_v1, %v28_v44  ;;  %v69_v58 = vadd.f32 %v161_v2, %v46_v51  ;;  %v70_v59 = vadd.f32 %v161_v2, %v47_v52 }
   0xe   :  { %v71_v60 = vadd.f32 %v161_v2, %v48_v53  ;;  %v84_v62 = vmax.f32 %v68_v54, 0.0  ;;  %v72_v63 = vadd.f32 %v161_v2, %v49_v55  ;;  %v73_v0 = vadd.f32 %v161_v2, %v50_v56 }
   0xf   :  { %v74_v3 = vadd.f32 %v161_v2, %v51_v57  ;;  %v85_v4 = vmax.f32 %v69_v58, 0.0  ;;  %v86_v5 = vmax.f32 %v70_v59, 0.0 }
  0x10   :  { %v87_v6 = vmax.f32 %v71_v60, 0.0  ;;  %v100_v8 = vmin.f32 %v84_v62, 6.0  ;;  %v88_v9 = vmax.f32 %v72_v63, 0.0  ;;  %v89_v10 = vmax.f32 %v73_v0, 0.0 }
  0x11   :  { %v90_v11 = vmax.f32 %v74_v3, 0.0  ;;  %v101_v12 = vmin.f32 %v85_v4, 6.0  ;;  %v102_v13 = vmin.f32 %v86_v5, 6.0 }
  0x12   :  { %v29_v49 = vld [vmem:[%s288_s0 + $0x78] sm:$0xff]  ;;  %v103_v14 = vmin.f32 %v87_v6, 6.0  ;;  %v104_v15 = vmin.f32 %v88_v9, 6.0  ;;  %v105_v16 = vmin.f32 %v89_v10, 6.0 }
  0x13   :  { %109 = vst [vmem:[%s291_s3 + $0x8] sm:$0xff] %v93_v39  ;;  %110 = vst [vmem:[%s291_s3 + $0x10] sm:$0xff] %v94_v40  ;;  %v52_v61 = vmul.f32 %v156_v1, %v29_v49  ;;  %v106_v17 = vmin.f32 %v90_v11, 6.0 }
  0x14   :  { %111 = vst [vmem:[%s291_s3 + $0x18] sm:$0xff] %v95_v41  ;;  %112 = vst [vmem:[%s291_s3 + $0x20] sm:$0xff] %v96_v45 }
  0x15   :  { %113 = vst [vmem:[%s291_s3 + $0x28] sm:$0xff] %v97_v46  ;;  %114 = vst [vmem:[%s291_s3 + $0x30] sm:$0xff] %v98_v47  ;;  %v75_v7 = vadd.f32 %v161_v2, %v52_v61 }
  0x16   :  { %115 = vst [vmem:[%s291_s3 + $0x38] sm:$0xff] %v99_v50  ;;  %116 = vst [vmem:[%s291_s3 + $0x40] sm:$0xff] %v100_v8 }
  0x17   :  { %v91_v1 = vmax.f32 %v75_v7, 0.0  ;;  %117 = vst [vmem:[%s291_s3 + $0x48] sm:$0xff] %v101_v12  ;;  %118 = vst [vmem:[%s291_s3 + $0x50] sm:$0xff] %v102_v13 }
  0x18   :  { %119 = vst [vmem:[%s291_s3 + $0x58] sm:$0xff] %v103_v14  ;;  %120 = vst [vmem:[%s291_s3 + $0x60] sm:$0xff] %v104_v15 }
  0x19   :  { %v107_v2 = vmin.f32 %v91_v1, 6.0  ;;  %121 = vst [vmem:[%s291_s3 + $0x68] sm:$0xff] %v105_v16  ;;  %122 = vst [vmem:[%s291_s3 + $0x70] sm:$0xff] %v106_v17 }
  0x1b   :  { %123 = vst [vmem:[%s291_s3 + $0x78] sm:$0xff] %v107_v2 }

// kernel: _conv_bn_act_layer.2
= control target key start
LH: loop header
LB: loop body
LE: loop exit
PB: predicated region body
PF: predicated region fallthrough
CT: control target
= control target key end

     0   :  { %vm82_vm0 = vcmask 588800   ;;  %s704_s1 = inlined_call_operand.vmem [shape: f32[72,128], index: 1, kind: input, shape index: {}]   ;;  %s705_s0 = inlined_call_operand.vmem [shape: f32[128,72], index: 0, kind: input, shape index: {}]   ;;  %s706_s2 = inlined_call_operand.vmem [shape: f32[128,128], index: 2, kind: output, shape index: {0}]   ;;  %s707_s3 = inlined_call_operand.vmem [shape: f32[1,128], index: 3, kind: output, shape index: {1}]   ;;  %s708_s4 = inlined_call_operand.vmem [shape: f32[1,128], index: 4, kind: output, shape index: {2}]  }
   0x1   :  { %v73_v0 = vld [vmem:[%s704_s1] sm:$0xff]  ;;  %v74_v1 = vld [vmem:[%s704_s1 + $0x8] sm:$0xff]  ;;  %v75_v2 = vld [vmem:[%s704_s1 + $0x10] sm:$0xff] }
   0x2   :  { %v508_v3 = vpack.c.bf16 %v74_v1, %v73_v0  ;;  %v76_v4 = vld [vmem:[%s704_s1 + $0x18] sm:$0xff]  ;;  %v77_v6 = vld [vmem:[%s704_s1 + $0x20] sm:$0xff]  ;;  %v78_v7 = vld [vmem:[%s704_s1 + $0x28] sm:$0xff] }
   0x3   :  { %v512_v5 = vpack.c.bf16 %v76_v4, %v75_v2  ;;  %v57_v8 = vld [vmem:[%s705_s0] sm:$0xff]  ;;  %v516_v9 = vpack.c.bf16 %v78_v7, %v77_v6  ;;  %v79_v11 = vld [vmem:[%s704_s1 + $0x30] sm:$0xff]  ;;  %v80_v12 = vld [vmem:[%s704_s1 + $0x38] sm:$0xff] }
   0x4   :  { %509 = vmatprep.subr.bf16.mxu0 %v508_v3  ;;  %524 = vmatprep.subr.bf16.mxu1 %v508_v3  ;;  %v65_v10 = vld [vmem:[%s705_s0 + $0x40] sm:$0xff]  ;;  %v520_v13 = vpack.c.bf16 %v80_v12, %v79_v11  ;;  %v58_v15 = vld [vmem:[%s705_s0 + $0x8] sm:$0xff]  ;;  %v59_v17 = vld [vmem:[%s705_s0 + $0x10] sm:$0xff] }
   0x5   :  { %511 = vmatpush3.bf16.msra.mxu0 %v508_v3  ;;  %529 = vmatpush3.bf16.msra.mxu1 %v508_v3  ;;  %v81_v14 = vld [vmem:[%s704_s1 + $0x40] sm:$0xff]  ;;  %v66_v16 = vld [vmem:[%s705_s0 + $0x48] sm:$0xff]  ;;  %v67_v18 = vld [vmem:[%s705_s0 + $0x50] sm:$0xff] }
   0x6   :  { %513 = vmatprep.subr.bf16.mxu0 %v512_v5  ;;  %484 = vmatprep.mubr.msk.f32.mxu0 %vm82_vm0, %v57_v8  ;;  %v60_v19 = vld [vmem:[%s705_s0 + $0x18] sm:$0xff]  ;;  %v61_v21 = vld [vmem:[%s705_s0 + $0x20] sm:$0xff]  ;;  %v62_v23 = vld [vmem:[%s705_s0 + $0x28] sm:$0xff] }
   0x7   :  { %525 = vmatprep.subr.bf16.mxu1 %v512_v5  ;;  %496 = vmatprep.mubr.msk.f32.mxu1 %vm82_vm0, %v65_v10  ;;  %v68_v20 = vld [vmem:[%s705_s0 + $0x58] sm:$0xff]  ;;  %v69_v22 = vld [vmem:[%s705_s0 + $0x60] sm:$0xff]  ;;  %v70_v24 = vld [vmem:[%s705_s0 + $0x68] sm:$0xff] }
   0x8   :  { %v63_v25 = vld [vmem:[%s705_s0 + $0x30] sm:$0xff]  ;;  %v64_v27 = vld [vmem:[%s705_s0 + $0x38] sm:$0xff] }
   0x9   :  { %515 = vmatpush3.bf16.msra.mxu0 %v512_v5  ;;  %530 = vmatpush3.bf16.msra.mxu1 %v512_v5  ;;  %v71_v26 = vld [vmem:[%s705_s0 + $0x70] sm:$0xff]  ;;  %v72_v28 = vld [vmem:[%s705_s0 + $0x78] sm:$0xff] }
   0xa   :  { %517 = vmatprep.subr.bf16.mxu0 %v516_v9  ;;  %526 = vmatprep.subr.bf16.mxu1 %v516_v9 }
   0xd   :  { %519 = vmatpush3.bf16.msra.mxu0 %v516_v9  ;;  %531 = vmatpush3.bf16.msra.mxu1 %v516_v9 }
   0xe   :  { %521 = vmatprep.subr.bf16.mxu0 %v520_v13  ;;  %527 = vmatprep.subr.bf16.mxu1 %v520_v13 }
  0x11   :  { %523 = vmatpush3.bf16.msra.mxu0 %v520_v13  ;;  %532 = vmatpush3.bf16.msra.mxu1 %v520_v13 }
  0x12   :  { %482 = vmatprep.subr.mxu0 %v81_v14  ;;  %528 = vmatprep.subr.mxu1 %v81_v14 }
  0x15   :  { %483 = vmatpush3.msra.mxu0 %v81_v14  ;;  %533 = vmatpush3.msra.mxu1 %v81_v14 }
  0x16   :  { %485 = vmatmul.mubr.msk.f32.vlgmr.msra.gmra.mrb[0].mxu0 %vm82_vm0, %v58_v15  ;;  %497 = vmatmul.mubr.msk.f32.vlgmr.msra.gmra.mrb[0].mxu1 %vm82_vm0, %v66_v16 }
  0x17   :  { %487 = vmatprep.mubr.msk.f32.mxu0 %vm82_vm0, %v59_v17  ;;  %499 = vmatprep.mubr.msk.f32.mxu1 %vm82_vm0, %v67_v18 }
  0x1a   :  { %488 = vmatmul.mubr.msk.f32.gmra.mrb[2].mxu0 %vm82_vm0, %v60_v19  ;;  %500 = vmatmul.mubr.msk.f32.gmra.mrb[2].mxu1 %vm82_vm0, %v68_v20 }
  0x1b   :  { %490 = vmatprep.mubr.msk.f32.mxu0 %vm82_vm0, %v61_v21  ;;  %502 = vmatprep.mubr.msk.f32.mxu1 %vm82_vm0, %v69_v22 }
  0x1e   :  { %491 = vmatmul.mubr.msk.f32.gmra.mrb[4].mxu0 %vm82_vm0, %v62_v23  ;;  %503 = vmatmul.mubr.msk.f32.gmra.mrb[4].mxu1 %vm82_vm0, %v70_v24 }
  0x1f   :  { %493 = vmatprep.mubr.msk.f32.mxu0 %vm82_vm0, %v63_v25  ;;  %505 = vmatprep.mubr.msk.f32.mxu1 %vm82_vm0, %v71_v26 }
  0x22   :  { %494 = vmatmul.mubr.msk.f32.gmra.mrb[6].mxu0 %vm82_vm0, %v64_v27  ;;  %506 = vmatmul.mubr.msk.f32.gmra.mrb[6].mxu1 %vm82_vm0, %v72_v28 }
  0xe9   :  { %v486_v29 = vpop.f32.mrb[0].mxu0  ;;  %v498_v30 = vpop.f32.mrb[0].mxu1 }
  0xea   :  { %328 = vst [vmem:[%s706_s2 + $0x8] sm:$0xff] %v486_v29  ;;  %v363_v31 = vmul.f32 %v486_v29, %v486_v29  ;;  %v197_v32 = vpop.f32.mrb[1].mxu0  ;;  %336 = vst [vmem:[%s706_s2 + $0x48] sm:$0xff] %v498_v30  ;;  %v237_v33 = vpop.f32.mrb[1].mxu1  ;;  %v371_v5 = vmul.f32 %v498_v30, %v498_v30 }
  0xeb   :  { %327 = vst [vmem:[%s706_s2] sm:$0xff] %v197_v32  ;;  %v344_v34 = vadd.f32 %v486_v29, %v197_v32  ;;  %v362_v35 = vmul.f32 %v197_v32, %v197_v32  ;;  %335 = vst [vmem:[%s706_s2 + $0x40] sm:$0xff] %v237_v33  ;;  %v370_v2 = vmul.f32 %v237_v33, %v237_v33 }
  0xed   :  { %v378_v36 = vadd.f32 %v363_v31, %v362_v35  ;;  %v489_v37 = vpop.f32.mrb[2].mxu0  ;;  %v501_v38 = vpop.f32.mrb[2].mxu1 }
  0xee   :  { %330 = vst [vmem:[%s706_s2 + $0x18] sm:$0xff] %v489_v37  ;;  %v207_v39 = vpop.f32.mrb[3].mxu0  ;;  %338 = vst [vmem:[%s706_s2 + $0x58] sm:$0xff] %v501_v38  ;;  %v247_v40 = vpop.f32.mrb[3].mxu1  ;;  %v365_v43 = vmul.f32 %v489_v37, %v489_v37  ;;  %v373_v11 = vmul.f32 %v501_v38, %v501_v38 }
  0xef   :  { %329 = vst [vmem:[%s706_s2 + $0x10] sm:$0xff] %v207_v39  ;;  %v345_v41 = vadd.f32 %v344_v34, %v207_v39  ;;  %v364_v42 = vmul.f32 %v207_v39, %v207_v39  ;;  %337 = vst [vmem:[%s706_s2 + $0x50] sm:$0xff] %v247_v40  ;;  %v372_v8 = vmul.f32 %v247_v40, %v247_v40 }
  0xf1   :  { %v379_v44 = vadd.f32 %v378_v36, %v364_v42  ;;  %v492_v45 = vpop.f32.mrb[4].mxu0  ;;  %v346_v46 = vadd.f32 %v489_v37, %v345_v41  ;;  %v504_v47 = vpop.f32.mrb[4].mxu1 }
  0xf2   :  { %332 = vst [vmem:[%s706_s2 + $0x28] sm:$0xff] %v492_v45  ;;  %v217_v48 = vpop.f32.mrb[5].mxu0  ;;  %340 = vst [vmem:[%s706_s2 + $0x68] sm:$0xff] %v504_v47  ;;  %v257_v49 = vpop.f32.mrb[5].mxu1  ;;  %v367_v53 = vmul.f32 %v492_v45, %v492_v45  ;;  %v375_v17 = vmul.f32 %v504_v47, %v504_v47 }
  0xf3   :  { %331 = vst [vmem:[%s706_s2 + $0x20] sm:$0xff] %v217_v48  ;;  %v347_v50 = vadd.f32 %v346_v46, %v217_v48  ;;  %v366_v51 = vmul.f32 %v217_v48, %v217_v48  ;;  %v380_v52 = vadd.f32 %v379_v44, %v365_v43  ;;  %339 = vst [vmem:[%s706_s2 + $0x60] sm:$0xff] %v257_v49 }
  0xf4   :  { %v374_v14 = vmul.f32 %v257_v49, %v257_v49 }
  0xf5   :  { %v381_v54 = vadd.f32 %v380_v52, %v366_v51  ;;  %v495_v55 = vpop.f32.mrb[6].mxu0  ;;  %v348_v56 = vadd.f32 %v492_v45, %v347_v50  ;;  %v507_v57 = vpop.f32.mrb[6].mxu1 }
  0xf6   :  { %334 = vst [vmem:[%s706_s2 + $0x38] sm:$0xff] %v495_v55  ;;  %v227_v58 = vpop.f32.mrb[7].mxu0  ;;  %342 = vst [vmem:[%s706_s2 + $0x78] sm:$0xff] %v507_v57  ;;  %v267_v59 = vpop.f32.mrb[7].mxu1  ;;  %v369_v63 = vmul.f32 %v495_v55, %v495_v55  ;;  %v377_v23 = vmul.f32 %v507_v57, %v507_v57 }
  0xf7   :  { %333 = vst [vmem:[%s706_s2 + $0x30] sm:$0xff] %v227_v58  ;;  %v349_v60 = vadd.f32 %v348_v56, %v227_v58  ;;  %v368_v61 = vmul.f32 %v227_v58, %v227_v58  ;;  %v382_v62 = vadd.f32 %v381_v54, %v367_v53  ;;  %341 = vst [vmem:[%s706_s2 + $0x70] sm:$0xff] %v267_v59 }
  0xf8   :  { %v376_v20 = vmul.f32 %v267_v59, %v267_v59 }
  0xf9   :  { %v350_v0 = vadd.f32 %v495_v55, %v349_v60  ;;  %v383_v1 = vadd.f32 %v382_v62, %v368_v61 }
  0xfb   :  { %v384_v3 = vadd.f32 %v383_v1, %v369_v63  ;;  %v351_v4 = vadd.f32 %v350_v0, %v237_v33 }
  0xfd   :  { %v385_v6 = vadd.f32 %v384_v3, %v370_v2  ;;  %v352_v7 = vadd.f32 %v498_v30, %v351_v4 }
  0xff   :  { %v353_v9 = vadd.f32 %v352_v7, %v247_v40  ;;  %v386_v10 = vadd.f32 %v385_v6, %v371_v5 }
 0x101   :  { %v387_v12 = vadd.f32 %v386_v10, %v372_v8  ;;  %v354_v13 = vadd.f32 %v501_v38, %v353_v9 }
 0x103   :  { %v355_v15 = vadd.f32 %v354_v13, %v257_v49  ;;  %v388_v16 = vadd.f32 %v387_v12, %v373_v11 }
 0x105   :  { %v389_v18 = vadd.f32 %v388_v16, %v374_v14  ;;  %v356_v19 = vadd.f32 %v504_v47, %v355_v15 }
 0x107   :  { %v357_v21 = vadd.f32 %v356_v19, %v267_v59  ;;  %v390_v22 = vadd.f32 %v389_v18, %v375_v17 }
 0x109   :  { %v358_v24 = vadd.f32 %v507_v57, %v357_v21  ;;  %v391_v25 = vadd.f32 %v390_v22, %v376_v20 }
 0x10b   :  { %v392_v26 = vadd.f32 %v391_v25, %v377_v23  ;;  %v398_v27 = vrot.slane %v358_v24, 4 }
 0x10d   :  { %v399_v28 = vadd.f32 %v398_v27, %v358_v24  ;;  %v406_v29 = vrot.slane %v392_v26, 4 }
 0x10f   :  { %v400_v30 = vrot.slane %v399_v28, 2  ;;  %v407_v31 = vadd.f32 %v406_v29, %v392_v26 }
 0x111   :  { %v401_v32 = vadd.f32 %v400_v30, %v399_v28  ;;  %v408_v33 = vrot.slane %v407_v31, 2 }
 0x113   :  { %v402_v34 = vrot.slane %v401_v32, 1  ;;  %v409_v35 = vadd.f32 %v408_v33, %v407_v31 }
 0x115   :  { %v403_v36 = vadd.f32 %v402_v34, %v401_v32  ;;  %v410_v37 = vrot.slane %v409_v35, 1 }
 0x117   :  { %404 = vst [vmem:[%s707_s3] sm:$0x1] %v403_v36  ;;  %v411_v38 = vadd.f32 %v410_v37, %v409_v35 }
 0x119   :  { %412 = vst [vmem:[%s708_s4] sm:$0x1] %v411_v38 }

</bundles_post_ra>
